<compile_context>
chip_gen: v6e
topology: v6e:2x2x1
jax: 0.10.0
libtpu: 0.0.40
codegen_flags: <defaults>
</compile_context>

<pallas_src>
import functools

import jax
import jax.numpy as jnp
from jax.experimental import pallas as pl
from jax.experimental.pallas import tpu as pltpu


MT_HEAD = 256                       # row tile for the depthnet head
VMEM_LIMIT = 48 * 1024 * 1024       # explicit scoped-VMEM ceiling (v7x-safe)


def _round_up(n, m):
    return ((n + m - 1) // m) * m


# ----------------------------- Pallas kernels ------------------------------

def _conv3x3_kernel(x_ref, w_ref, b_ref, m_ref, o_ref, *, TH, W8):
    """3x3 conv tile: 3 height-tap matmuls over a width-concat (3*Cin) input.

    x_ref : (Hp*W8, 3*Cin) bf16  - whole padded image (VMEM resident per b)
    w_ref : (3, 3*Cin, Cout) bf16 - full weight, BN scale folded (resident)
    b_ref : (1, Cout) f32        - folded BN bias
    m_ref : (TH*W8, 1) f32       - 0/1 mask that re-zeroes the W pad columns
    o_ref : (TH*W8, Cout) bf16   - lane-dense output row tile
    """
    i = pl.program_id(1)
    acc = None
    for dh in range(3):                                   # height taps, unrolled
        start = pl.multiple_of((i * TH + dh) * W8, 8)      # aligned row start
        slab = x_ref[pl.ds(start, TH * W8), :]             # (TH*W8, 3*Cin) bf16
        p = jnp.dot(slab, w_ref[dh], preferred_element_type=jnp.float32)
        acc = p if acc is None else acc + p
    o_ref[...] = (jnp.maximum(acc + b_ref[...], 0.0) * m_ref[...]).astype(o_ref.dtype)


def _depthnet_head_kernel(x_ref, w_ref, b_ref, ed_ref, ef_ref,
                          depth_ref, out_ref, *, D):
    """Fused 1x1 conv (+bias, 128 padded lanes) -> masked softmax over the
    first D lanes -> lane-dense depth[n,d]*feat[n,c] outer product written as
    an (Mt, D*C) slab via two bf16 0/1 expansion matmuls."""
    y = jnp.dot(x_ref[...], w_ref[...],
                preferred_element_type=jnp.float32) + b_ref[...]
    lane = jax.lax.broadcasted_iota(jnp.int32, y.shape, 1)
    logits = jnp.where(lane < D, y, jnp.float32(-1e30))
    m = jnp.max(logits, axis=-1, keepdims=True)
    e = jnp.exp(logits - m)                                # masked lanes -> 0
    inv = pl.reciprocal(jnp.sum(e, axis=-1, keepdims=True), approx=True)
    depth = e * inv                                        # f32 softmax
    depth_ref[...] = depth
    # depth_exp[n, d*C+c] = depth[n, d] ; feat_exp[n, d*C+c] = y[n, D+c]
    depth_exp = jnp.dot(depth.astype(jnp.bfloat16), ed_ref[...],
                        preferred_element_type=jnp.float32)
    feat_exp = jnp.dot(y.astype(jnp.bfloat16), ef_ref[...],
                       preferred_element_type=jnp.float32)
    out_ref[...] = (depth_exp * feat_exp).astype(out_ref.dtype)


# ------------------------------ Pallas wrappers -----------------------------

def _pick_th(Hf, W8, target_rows=512):
    """Largest divisor of Hf with TH*W8 <= target_rows (>= 1)."""
    best = 1
    for t in range(1, Hf + 1):
        if Hf % t == 0 and t * W8 <= target_rows:
            best = t
    return best


def conv3x3_bn_relu(x_nhwc, w3, bias, w_valid):
    """3x3 same-padding conv (bias-free) + folded eval-mode BN + ReLU.

    x_nhwc : (B, Hf, Win, Cin); columns >= w_valid of the *output* are zeroed
    w3     : (3, 3*Cin, Cout) bf16 (kh, kw*cin, cout), BN scale folded in
    bias   : (1, Cout) f32 folded BN bias
    returns (B, Hf, W8, Cout) bf16 with W8 = round_up(Win, 8).
    """
    B, Hf, Win, Cin = x_nhwc.shape
    _, K, Cout = w3.shape
    assert K == 3 * Cin
    W8 = _round_up(Win, 8)
    Hp = Hf + 2

    x = x_nhwc.astype(jnp.bfloat16)
    # zero-pad: 1 row top/bottom, 1 col left, (W8-Win)+1 cols right
    xp = jnp.pad(x, ((0, 0), (1, 1), (1, 1 + W8 - Win), (0, 0)))
    # width taps concatenated on the channel (lane) axis -> (B, Hp, W8, 3*Cin)
    xw = jnp.concatenate([xp[:, :, dw:dw + W8, :] for dw in range(3)], axis=-1)
    xf = xw.reshape(B * Hp * W8, 3 * Cin)

    TH = _pick_th(Hf, W8)
    R = TH * W8
    n_i = Hf // TH
    mask = (jnp.arange(R) % W8 < w_valid).astype(jnp.float32).reshape(R, 1)

    out = pl.pallas_call(
        functools.partial(_conv3x3_kernel, TH=TH, W8=W8),
        grid=(B, n_i),
        in_specs=[
            pl.BlockSpec((Hp * W8, 3 * Cin), lambda b, i: (b, 0)),   # per-image slab
            pl.BlockSpec((3, 3 * Cin, Cout), lambda b, i: (0, 0, 0)),  # resident W
            pl.BlockSpec((1, Cout), lambda b, i: (0, 0)),
            pl.BlockSpec((R, 1), lambda b, i: (0, 0)),
        ],
        out_specs=pl.BlockSpec((R, Cout), lambda b, i: (b * n_i + i, 0)),
        out_shape=jax.ShapeDtypeStruct((B * Hf * W8, Cout), jnp.bfloat16),
        compiler_params=pltpu.CompilerParams(
            dimension_semantics=("parallel", "parallel"),
            vmem_limit_bytes=VMEM_LIMIT),
    )(xf, w3.astype(jnp.bfloat16), bias.astype(jnp.float32), mask)
    return out.reshape(B, Hf, W8, Cout)


def depthnet_head(h2d, w_mat, bias, e_depth, e_feat, D):
    """M-tiled fused depthnet head.  h2d: (N, 512) bf16 pixel features."""
    N, Cin = h2d.shape
    P = w_mat.shape[1]
    DC = e_depth.shape[1]
    Np = _round_up(N, MT_HEAD)
    x = h2d if Np == N else jnp.pad(h2d, ((0, Np - N), (0, 0)))

    depth_pad, out_flat = pl.pallas_call(
        functools.partial(_depthnet_head_kernel, D=D),
        grid=(Np // MT_HEAD,),
        in_specs=[
            pl.BlockSpec((MT_HEAD, Cin), lambda i: (i, 0)),
            pl.BlockSpec((Cin, P), lambda i: (0, 0)),
            pl.BlockSpec((1, P), lambda i: (0, 0)),
            pl.BlockSpec((P, DC), lambda i: (0, 0)),
            pl.BlockSpec((P, DC), lambda i: (0, 0)),
        ],
        out_specs=(
            pl.BlockSpec((MT_HEAD, P), lambda i: (i, 0)),
            pl.BlockSpec((MT_HEAD, DC), lambda i: (i, 0)),
        ),
        out_shape=(
            jax.ShapeDtypeStruct((Np, P), jnp.float32),
            jax.ShapeDtypeStruct((Np, DC), jnp.bfloat16),
        ),
        compiler_params=pltpu.CompilerParams(
            dimension_semantics=("parallel",),
            vmem_limit_bytes=VMEM_LIMIT),
    )(x.astype(jnp.bfloat16), w_mat, bias, e_depth, e_feat)
    return depth_pad[:N], out_flat[:N]


# ------------------------------ JAX glue ops --------------------------------

def upsample2x_bilinear_align_corners(x):
    """nn.Upsample(scale_factor=2, mode='bilinear', align_corners=True), NHWC."""
    B, H, W, C = x.shape
    Ho, Wo = 2 * H, 2 * W
    hs = jnp.arange(Ho, dtype=jnp.float32) * ((H - 1) / (Ho - 1) if Ho > 1 else 0.0)
    ws = jnp.arange(Wo, dtype=jnp.float32) * ((W - 1) / (Wo - 1) if Wo > 1 else 0.0)
    h0 = jnp.floor(hs).astype(jnp.int32)
    w0 = jnp.floor(ws).astype(jnp.int32)
    h1 = jnp.minimum(h0 + 1, H - 1)
    w1 = jnp.minimum(w0 + 1, W - 1)
    fh = (hs - h0.astype(jnp.float32)).reshape(1, Ho, 1, 1)
    fw = (ws - w0.astype(jnp.float32)).reshape(1, 1, Wo, 1)
    x00 = x[:, h0][:, :, w0]
    x01 = x[:, h0][:, :, w1]
    x10 = x[:, h1][:, :, w0]
    x11 = x[:, h1][:, :, w1]
    top = x00 * (1.0 - fw) + x01 * fw
    bot = x10 * (1.0 - fw) + x11 * fw
    return top * (1.0 - fh) + bot * fh


# TODO(synk): EfficientNet-b0 trunk has no clean Pallas translation here;
# deterministic downsampling stub producing reduction_4 (stride 16, 112 ch)
# and reduction_5 (stride 32, 320 ch) with the shapes CamEncode expects.
def trunk_stub(x_nhwc, proj4, proj5):
    B, H, W, Cin = x_nhwc.shape
    r4 = x_nhwc.reshape(B, H // 16, 16, W // 16, 16, Cin).mean(axis=(2, 4))
    r5 = x_nhwc.reshape(B, H // 32, 32, W // 32, 32, Cin).mean(axis=(2, 4))
    red4 = jnp.tanh(r4 @ proj4)   # (B, H/16, W/16, 112)
    red5 = jnp.tanh(r5 @ proj5)   # (B, H/32, W/32, 320)
    return red4, red5


# ------------------------------ Parameters ----------------------------------

def _fold_conv_bn(key, cin, cout, eps=1e-5):
    """Conv2d(cin,cout,3,bias=False) + eval-mode BatchNorm folded:
    returns ((3, 3*cin, cout) bf16 weight with BN scale in columns, (1,cout) f32 bias)."""
    kw, kg, kb, km, kv = jax.random.split(key, 5)
    w = 0.05 * jax.random.normal(kw, (cout, cin, 3, 3), jnp.float32)      # OIHW
    gamma = 1.0 + 0.1 * jax.random.normal(kg, (cout,), jnp.float32)
    beta = 0.1 * jax.random.normal(kb, (cout,), jnp.float32)
    mean = 0.1 * jax.random.normal(km, (cout,), jnp.float32)
    var = 1.0 + 0.1 * jnp.abs(jax.random.normal(kv, (cout,), jnp.float32))
    scale = gamma / jnp.sqrt(var + eps)
    bias = beta - mean * scale
    wmat = w.transpose(2, 3, 1, 0).reshape(3, 3 * cin, cout) * scale       # fold BN scale
    return wmat.astype(jnp.bfloat16), bias.reshape(1, cout)


def _expansion_mats(D, C, P):
    """E_depth[p, d*C+c] = (p == d); E_feat[p, d*C+c] = (p == D + c).  bf16 (exact)."""
    cols = jnp.arange(D * C)
    d_idx = jnp.repeat(jnp.arange(D), C)
    c_idx = jnp.tile(jnp.arange(C), D)
    e_depth = jnp.zeros((P, D * C), jnp.float32).at[d_idx, cols].set(1.0)
    e_feat = jnp.zeros((P, D * C), jnp.float32).at[D + c_idx, cols].set(1.0)
    return e_depth.astype(jnp.bfloat16), e_feat.astype(jnp.bfloat16)


def init_params(key, D, C):
    ks = jax.random.split(key, 6)
    p = {}
    p["proj4"] = 0.5 * jax.random.normal(ks[0], (3, 112), jnp.float32)
    p["proj5"] = 0.5 * jax.random.normal(ks[1], (3, 320), jnp.float32)
    # Up(320 + 112, 512): two Conv2d(...,3,padding=1,bias=False)+BN+ReLU
    p["w1"], p["b1"] = _fold_conv_bn(ks[2], 432, 512)
    p["w2"], p["b2"] = _fold_conv_bn(ks[3], 512, 512)
    # depthnet: Conv2d(512, D+C, 1) with bias, padded to 128 output lanes
    P = max(128, _round_up(D + C, 128))
    wd = 0.05 * jax.random.normal(ks[4], (D + C, 512), jnp.float32)
    p["wd"] = jnp.pad(wd.T, ((0, 0), (0, P - (D + C)))).astype(jnp.bfloat16)
    bd = 0.1 * jax.random.normal(ks[5], (D + C,), jnp.float32)
    p["bd"] = jnp.pad(bd, (0, P - (D + C))).reshape(1, P)
    p["e_depth"], p["e_feat"] = _expansion_mats(D, C, P)
    return p


# ------------------------------- Forward -------------------------------------

def cam_encode_forward(x_nchw, params, *, D, C):
    x = jnp.transpose(x_nchw, (0, 2, 3, 1))                  # NCHW -> NHWC
    red4, red5 = trunk_stub(x, params["proj4"], params["proj5"])
    x1 = upsample2x_bilinear_align_corners(red5)              # (B, H/16, W/16, 320)
    cat = jnp.concatenate([red4, x1], axis=-1)                # (B, H/16, W/16, 432)
    B, Hf, Wf, _ = cat.shape
    h = conv3x3_bn_relu(cat, params["w1"], params["b1"], w_valid=Wf)   # (B,Hf,W8,512)
    h = conv3x3_bn_relu(h, params["w2"], params["b2"], w_valid=Wf)     # (B,Hf,W8,512)
    Bh, Hh, W8, Cc = h.shape
    h2d = h.reshape(Bh * Hh * W8, Cc)
    P = params["wd"].shape[1]
    depth_pad, out_flat = depthnet_head(h2d, params["wd"], params["bd"],
                                        params["e_depth"], params["e_feat"], D)
    # TODO(synk): if the downstream voxel-pooling consumer accepts NHWC-style
    # layouts, these final transposes (extra HBM passes) can be dropped.
    depth = depth_pad.reshape(B, Hf, W8, P)[:, :, :Wf, :D].transpose(0, 3, 1, 2)
    new_x = out_flat.reshape(B, Hf, W8, D, C)[:, :, :Wf].transpose(0, 4, 3, 1, 2)
    return depth, new_x                                       # forward() returns new_x


if __name__ == "__main__":
    key = jax.random.PRNGKey(0)
    k_param, k_x = jax.random.split(key)

    B, H, W = 2, 64, 64          # image input (NCHW, like PyTorch)
    D, C = 8, 16                 # depth bins / context channels

    # --- sanity check the Pallas conv kernel against XLA's conv (loose bf16 tol)
    xc = jax.random.normal(jax.random.PRNGKey(1), (2, 4, 4, 48), jnp.float32)
    wc = 0.05 * jax.random.normal(jax.random.PRNGKey(2), (3, 3 * 48, 128), jnp.float32)
    bc = 0.1 * jax.random.normal(jax.random.PRNGKey(3), (1, 128), jnp.float32)
    got = conv3x3_bn_relu(xc, wc.astype(jnp.bfloat16), bc, w_valid=4)[:, :, :4, :]
    ref = jax.lax.conv_general_dilated(
        xc.astype(jnp.bfloat16).astype(jnp.float32),
        wc.reshape(3, 3, 48, 128), (1, 1), "SAME",
        dimension_numbers=("NHWC", "HWIO", "NHWC")) + bc.reshape(1, 1, 1, 128)
    ref = jnp.maximum(ref, 0.0)
    assert jnp.allclose(got.astype(jnp.float32), ref, atol=0.2, rtol=0.2)

    params = init_params(k_param, D, C)
    x = jax.random.normal(k_x, (B, 3, H, W), jnp.float32)

    fwd = jax.jit(functools.partial(cam_encode_forward, D=D, C=C))
    depth, new_x = fwd(x, params)
    jax.block_until_ready(new_x)

    assert depth.shape == (B, D, H // 16, W // 16)
    assert new_x.shape == (B, C, D, H // 16, W // 16)
    # softmax over the D axis must sum to ~1 (approx reciprocal tolerance)
    assert jnp.allclose(depth.sum(axis=1), 1.0, atol=0.05)
    print("KERNEL_OK")
</pallas_src>

<mosaic_0001>
module attributes {stable_mosaic.version = 11 : i64} {
  func.func @_conv3x3_kernel(%arg0: i32, %arg1: i32, %arg2: memref<48x144xbf16, #tpu.memory_space<vmem>>, %arg3: memref<3x144x128xbf16, #tpu.memory_space<vmem>>, %arg4: memref<1x128xf32, #tpu.memory_space<vmem>>, %arg5: memref<32x1xf32, #tpu.memory_space<vmem>>, %arg6: memref<32x128xbf16, #tpu.memory_space<vmem>>) attributes {dimension_semantics = [#tpu.dimension_semantics<parallel>, #tpu.dimension_semantics<parallel>], iteration_bounds = array<i64: 2, 1>, scalar_prefetch = 0 : i64, scratch_operands = 0 : i64, tpu.core_type = #tpu.core_type<tc>, window_params = [{transform_indices = @transform_0, window_bounds = array<i64: 48, 144>}, {pipeline_mode = #tpu.pipeline_mode<synchronous>, transform_indices = @transform_1, window_bounds = array<i64: 3, 144, 128>}, {pipeline_mode = #tpu.pipeline_mode<synchronous>, transform_indices = @transform_2, window_bounds = array<i64: 1, 128>}, {pipeline_mode = #tpu.pipeline_mode<synchronous>, transform_indices = @transform_3, window_bounds = array<i64: 32, 1>}, {transform_indices = @transform_4, window_bounds = array<i64: 32, 128>}]} {
    %c4_i32 = arith.constant 4 : i32
    %0 = arith.muli %arg1, %c4_i32 : i32
    %c0_i32 = arith.constant 0 : i32
    %1 = arith.addi %0, %c0_i32 : i32
    %c8_i32 = arith.constant 8 : i32
    %2 = arith.muli %1, %c8_i32 : i32
    %3 = tpu.assume_multiple %2, 8 : i32
    %4 = arith.index_cast %3 : i32 to index
    %c0 = arith.constant 0 : index
    %5 = vector.load %arg2[%4, %c0] : memref<48x144xbf16, #tpu.memory_space<vmem>>, vector<32x144xbf16>
    %c0_0 = arith.constant 0 : index
    %c0_1 = arith.constant 0 : index
    %c0_2 = arith.constant 0 : index
    %6 = vector.load %arg3[%c0_0, %c0_1, %c0_2] : memref<3x144x128xbf16, #tpu.memory_space<vmem>>, vector<1x144x128xbf16>
    %7 = vector.shape_cast %6 : vector<1x144x128xbf16> to vector<144x128xbf16>
    %cst = arith.constant dense<0.000000e+00> : vector<32x128xf32>
    %8 = tpu.matmul %5, %7, %cst {dimension_numbers = #tpu.dot_dimension_numbers<[1], [0], [0], [1], [0, 0, 1, 1], [], []>} : vector<32x144xbf16>, vector<144x128xbf16>, vector<32x128xf32> -> vector<32x128xf32>
    %c4_i32_3 = arith.constant 4 : i32
    %9 = arith.muli %arg1, %c4_i32_3 : i32
    %c1_i32 = arith.constant 1 : i32
    %10 = arith.addi %9, %c1_i32 : i32
    %c8_i32_4 = arith.constant 8 : i32
    %11 = arith.muli %10, %c8_i32_4 : i32
    %12 = tpu.assume_multiple %11, 8 : i32
    %13 = arith.index_cast %12 : i32 to index
    %c0_5 = arith.constant 0 : index
    %14 = vector.load %arg2[%13, %c0_5] : memref<48x144xbf16, #tpu.memory_space<vmem>>, vector<32x144xbf16>
    %c1 = arith.constant 1 : index
    %c0_6 = arith.constant 0 : index
    %c0_7 = arith.constant 0 : index
    %15 = vector.load %arg3[%c1, %c0_6, %c0_7] : memref<3x144x128xbf16, #tpu.memory_space<vmem>>, vector<1x144x128xbf16>
    %16 = vector.shape_cast %15 : vector<1x144x128xbf16> to vector<144x128xbf16>
    %cst_8 = arith.constant dense<0.000000e+00> : vector<32x128xf32>
    %17 = tpu.matmul %14, %16, %cst_8 {dimension_numbers = #tpu.dot_dimension_numbers<[1], [0], [0], [1], [0, 0, 1, 1], [], []>} : vector<32x144xbf16>, vector<144x128xbf16>, vector<32x128xf32> -> vector<32x128xf32>
    %18 = arith.addf %8, %17 : vector<32x128xf32>
    %c4_i32_9 = arith.constant 4 : i32
    %19 = arith.muli %arg1, %c4_i32_9 : i32
    %c2_i32 = arith.constant 2 : i32
    %20 = arith.addi %19, %c2_i32 : i32
    %c8_i32_10 = arith.constant 8 : i32
    %21 = arith.muli %20, %c8_i32_10 : i32
    %22 = tpu.assume_multiple %21, 8 : i32
    %23 = arith.index_cast %22 : i32 to index
    %c0_11 = arith.constant 0 : index
    %24 = vector.load %arg2[%23, %c0_11] : memref<48x144xbf16, #tpu.memory_space<vmem>>, vector<32x144xbf16>
    %c2 = arith.constant 2 : index
    %c0_12 = arith.constant 0 : index
    %c0_13 = arith.constant 0 : index
    %25 = vector.load %arg3[%c2, %c0_12, %c0_13] : memref<3x144x128xbf16, #tpu.memory_space<vmem>>, vector<1x144x128xbf16>
    %26 = vector.shape_cast %25 : vector<1x144x128xbf16> to vector<144x128xbf16>
    %cst_14 = arith.constant dense<0.000000e+00> : vector<32x128xf32>
    %27 = tpu.matmul %24, %26, %cst_14 {dimension_numbers = #tpu.dot_dimension_numbers<[1], [0], [0], [1], [0, 0, 1, 1], [], []>} : vector<32x144xbf16>, vector<144x128xbf16>, vector<32x128xf32> -> vector<32x128xf32>
    %28 = arith.addf %18, %27 : vector<32x128xf32>
    %c0_15 = arith.constant 0 : index
    %c0_16 = arith.constant 0 : index
    %29 = vector.load %arg4[%c0_15, %c0_16] : memref<1x128xf32, #tpu.memory_space<vmem>>, vector<1x128xf32>
    %30 = vector.broadcast %29 : vector<1x128xf32> to vector<32x128xf32>
    %31 = arith.addf %28, %30 : vector<32x128xf32>
    %cst_17 = arith.constant 0.000000e+00 : f32
    %32 = vector.broadcast %cst_17 : f32 to vector<32x128xf32>
    %33 = arith.maximumf %31, %32 : vector<32x128xf32>
    %c0_18 = arith.constant 0 : index
    %c0_19 = arith.constant 0 : index
    %34 = vector.load %arg5[%c0_18, %c0_19] : memref<32x1xf32, #tpu.memory_space<vmem>>, vector<32x1xf32>
    %35 = vector.broadcast %34 : vector<32x1xf32> to vector<32x128xf32>
    %36 = arith.mulf %33, %35 : vector<32x128xf32>
    %37 = arith.truncf %36 : vector<32x128xf32> to vector<32x128xbf16>
    %c0_20 = arith.constant 0 : index
    %c0_21 = arith.constant 0 : index
    %38 = vector.load %arg6[%c0_20, %c0_21] : memref<32x128xbf16, #tpu.memory_space<vmem>>, vector<32x128xbf16>
    tpu.vector_store %arg6[%c0_20, %c0_21], %37 {strides = array<i32>} : memref<32x128xbf16, #tpu.memory_space<vmem>>, vector<32x128xbf16>,
    return
  }
  func.func @transform_0(%arg0: i32, %arg1: i32) -> (i32, i32) {
    %c0_i32 = arith.constant 0 : i32
    %c0_i32_0 = arith.constant 0 : i32
    return %arg0, %c0_i32 : i32, i32
  }
  func.func @transform_1(%arg0: i32, %arg1: i32) -> (i32, i32, i32) {
    %c0_i32 = arith.constant 0 : i32
    %c0_i32_0 = arith.constant 0 : i32
    %c0_i32_1 = arith.constant 0 : i32
    %c0_i32_2 = arith.constant 0 : i32
    return %c0_i32, %c0_i32_0, %c0_i32_1 : i32, i32, i32
  }
  func.func @transform_2(%arg0: i32, %arg1: i32) -> (i32, i32) {
    %c0_i32 = arith.constant 0 : i32
    %c0_i32_0 = arith.constant 0 : i32
    %c0_i32_1 = arith.constant 0 : i32
    return %c0_i32, %c0_i32_0 : i32, i32
  }
  func.func @transform_3(%arg0: i32, %arg1: i32) -> (i32, i32) {
    %c0_i32 = arith.constant 0 : i32
    %c0_i32_0 = arith.constant 0 : i32
    %c0_i32_1 = arith.constant 0 : i32
    return %c0_i32, %c0_i32_0 : i32, i32
  }
  func.func @transform_4(%arg0: i32, %arg1: i32) -> (i32, i32) {
    %c1_i32 = arith.constant 1 : i32
    %0 = arith.muli %arg0, %c1_i32 : i32
    %1 = arith.addi %0, %arg1 : i32
    %c0_i32 = arith.constant 0 : i32
    %c0_i32_0 = arith.constant 0 : i32
    return %1, %c0_i32 : i32, i32
  }
}

</mosaic_0001>

<bundles_post_ra>
// kernel: tpu_custom_call.1
= control target key start
LH: loop header
LB: loop body
LE: loop exit
PB: predicated region body
PF: predicated region fallthrough
CT: control target
= control target key end

     0   :  { %9 = vsyncpa [#allocation3], 0  ;;  %s1444_s0 = inlined_call_operand.vmem [shape: bf16[96,144], index: 0, kind: input, shape index: {}]   ;;  %s1445_s1 = inlined_call_operand.hbm [shape: bf16[3,144,128], index: 1, kind: input, shape index: {}]   ;;  %s1446_s2 = inlined_call_operand.vmem [shape: f32[1,128], index: 2, kind: input, shape index: {}]   ;;  %s1447_s3 = inlined_call_operand.vmem [shape: f32[32,1], index: 3, kind: input, shape index: {}]   ;;  %s1448_s4 = inlined_call_operand.hbm [shape: bf16[64,128], index: 4, kind: output, shape index: {}]  }
   0x1   :  { %10 = vsyncpa [#allocation4], 0 }
   0x2   :  { %12 = vsyncpa [#allocation4 + $0x1], 0  ;;  %s1233_s15 = smov 0   ;;  %s1235_s16 = smov 0  }
   0x3   :  { %s1237_s17 = smov 0   ;;  %s1239_s18 = smov 0  }
   0x4   :  { %s1241_s19 = smov 0   ;;  %s1243_s20 = smov 0  }
   0x5 LB: > { %s875_s21 = sadd.s32 4294967295, %s1199_s20   ;;  %s876_s22 = sadd.s32 4294967294, %s1199_s20   ;;  %s1199_s20 = sphi %s1243_s20, %s18_s20   ;;  %s1195_s19 = sphi %s1241_s19, %s1457_s19   ;;  %s1191_s18 = sphi %s1239_s18, %s1456_s18   ;;  %s1187_s17 = sphi %s1237_s17, %s1455_s17   ;;  %s1183_s16 = sphi %s1235_s16, %s1454_s16   ;;  %s1179_s15 = sphi %s1233_s15, %s1453_s15  }
   0x6   : > { %s30_s23 = sadd.s32 1, %s1195_s19  ;;  %s128_s24 = sadd.s32 1, %s1187_s17 }
   0x7   : > { %p32_p0 = scmp.ge.s32.totalorder %s30_s23, 2  ;;  %p138_p1 = scmp.ne.s32.totalorder %s1187_s17, %s1183_s16 }
   0x8   : > { %p139_p2 = scmp.eq.s32.totalorder %s875_s21, 1  ;;  %p144_p3 = scmp.ne.s32.totalorder %s1183_s16, %s1179_s15 }
   0x9   : > { %s1459_s23 = smov (%p32_p0, %s30_s23), 0  ;;  %p145_p5 = scmp.eq.s32.totalorder %s876_s22, 1 }
   0xa   : > { %p1273_p4 = por %p139_p2, %p138_p1  ;;  %s125_s26 = ssub.s32 %s1195_s19, %s1459_s23 }
   0xb   : > { %p877_p6 = scmp.ge.s32.totalorder %s1199_s20, 1  ;;  %p126_p7 = scmp.eq.s32.totalorder %s125_s26, 0 }
   0xc   : > { %p1280_p8 = por %p145_p5, %p144_p3  ;;  %p152_p9 = scmp.lt.s32.totalorder %s1199_s20, 3 }
   0xd   : > { %s1286_s28 = scalar_select %p126_p7, %s1187_s17, %s128_s24  }
   0xe   : > { %p1288_p10 = pnand %p877_p6, %p152_p9  ;;  %p1292_p11 = scmp.eq.s32.totalorder %s875_s21, 0 }
   0xf   : > { %s1201_s5 = smov [#allocation2]  }
  0x10   : > { %p989_p12 = pneg %p1288_p10  ;;  %s164_s6 = sshll.u32 %s1201_s5, 4  ;;  %s165_s6 = int_to_ptr.vmem [resolvable:$true] %s164_s6 }
  0x11   : > { %s1104_s7 = scalar_lea.vmem %s165_s6, 3456  ;;  %p1112_p5 = scmp.lt.s32.totalorder %s165_s6, %s165_s6 }
  0x12   : > { %p990_p13 = pnand %p1292_p11, %p989_p12  ;;  %p1105_p1 = scmp.ne.s32.totalorder %s165_s6, %s1104_s7 }
  0x13   : > { %p1113_p6 = scmp.lt.s32.totalorder %s1104_s7, %s1104_s7 }
  0x14   : > { %p1095_p0 = pneg %p990_p13 }
  0x15   : > { %p1114_p7 = por %p1113_p6, %p1112_p5 }
  0x16   : > { %p1107_p2 = pnand %p1105_p1, %p1095_p0 }
  0x18   : > { %p1108_p3 = pneg %p1107_p2 }
  0x1a   : > { %p1115_p9 = pnand %p1114_p7, %p1108_p3 }
  0x1c   : > { %1118 = shalt.err (!%p1115_p9)
}
  0x1d   : > { %s1202_s8 = smov 64   ;;  %s1203_s9 = smov 4  }
  0x1e   : > { %992 = dma.hbm_to_vmem [thread:$0]  (!%p990_p13), %s1445_s1, 3456, %s165_s6, [#allocation3], %s1202_s8, %s1202_s8, %s1203_s9  }
  0x1f   : > { %196 = sbr.rel (%p1288_p10) target bundleno = 332 (0x14c), region = 36 }
  0x24   : > { %1170 = dma.done.wait (%p1292_p11), [#allocation3], 3456  }
  0x25   : > { %1172 = vsyncadd (%p1292_p11), [#allocation3], 4294963840  ;;  %v1204_v0 = vmov 0   ;;  %v1056_v1 = vld [vmem:[#allocation2 + $0x80] sm:$0xff]   ;;  %s223_s12 = smul.u32 6, %s1191_s18  ;;  %v1057_v2 = vld [vmem:[#allocation2 + $0x38] sm:$0xff]  }
  0x26   : > { %371 = vmatprep.subr.bf16.mxu0 %v1204_v0  ;;  %498 = vmatprep.subr.bf16.mxu1 %v1204_v0  ;;  %v1058_v3 = vld [vmem:[#allocation2 + $0x78] sm:$0xff]   ;;  %v1059_v4 = vld [vmem:[#allocation2 + $0x30] sm:$0xff]   ;;  %v1061_v6 = vld [vmem:[#allocation2 + $0x28] sm:$0xff]   ;;  %vm364_vm0 = vcmask 130048   ;;  %s220_s11 = sand.u32 1, %s1183_s16   ;;  %s953_s21 = sshll.u32 %s1191_s18, 8 }
  0x27   : > { %1055 = vset.pattern.permute.xlu1 %v1204_v0  ;;  %1054 = vset.pattern.permute.xlu0 %v1204_v0  ;;  %p224_p10 = scmp.lt.s32.totalorder %s223_s12, 11  ;;  %v1060_v5 = vld [vmem:[#allocation2 + $0x70] sm:$0xff]   ;;  %v1062_v7 = vld [vmem:[#allocation2 + $0x68] sm:$0xff]   ;;  %v1063_v8 = vld [vmem:[#allocation2 + $0x20] sm:$0xff]   ;;  %s1395_s26 = scalar_lea.hbm %s1448_s4, %s953_s21 }
  0x28   : > { %372 = vmatpush1.bf16.msra.mxu0 %v1056_v1  ;;  %499 = vmatpush1.bf16.msra.mxu1 %v1057_v2  ;;  %v1064_v9 = vld [vmem:[#allocation2 + $0x60] sm:$0xff]   ;;  %v1065_v10 = vld [vmem:[#allocation2 + $0x18] sm:$0xff]   ;;  %v1067_v15 = vld [vmem:[#allocation2 + $0x10] sm:$0xff]   ;;  %s1399_s18 = scalar_lea.sflag [#allocation4], %s220_s11  ;;  %s1205_s30 = smov [#allocation5]  }
  0x29   : > { %373 = vmatprep.subr.bf16.mxu0 %v1204_v0  ;;  %500 = vmatprep.subr.bf16.mxu1 %v1204_v0  ;;  %s1461_s12 = smov (!%p224_p10, %s223_s12), 11  ;;  %v1066_v11 = vld [vmem:[#allocation2 + $0x58] sm:$0xff]   ;;  %v1068_v18 = vld [vmem:[#allocation2 + $0x50] sm:$0xff]   ;;  %v1069_v19 = vld [vmem:[#allocation2 + $0x8] sm:$0xff]   ;;  %s1123_s5 = sshll.u32 %s1205_s30, 4  ;;  %s1124_s5 = int_to_ptr.vmem [resolvable:$false] %s1123_s5 }
  0x2a   : > { %s948_s13 = sshll.u32 %s1461_s12, 3  ;;  %v1070_v20 = vld [vmem:[#allocation2 + $0x48] sm:$0xff]   ;;  %v1071_v21 = vld [vmem:[#allocation2] sm:$0xff]   ;;  %v725_v22 = vld [vmem:[%s1447_s3 + $0x10] sm:$0xff]  ;;  %s882_s12 = sshll.u32 %s220_s11, 4 }
  0x2b   : > { %s1324_s22 = scalar_lea.vmem %s1444_s0, %s948_s13  ;;  %v723_v23 = vld [vmem:[%s1447_s3] sm:$0xff]  ;;  %v1072_v24 = vld [vmem:[#allocation2 + $0x88] sm:$0xff]   ;;  %739 = vperm.xlu1 %1055, %v725_v22   ;;  %v726_v26 = vld [vmem:[%s1447_s3 + $0x18] sm:$0xff]  ;;  %s222_s13 = scalar_lea.vmem [#allocation5], %s882_s12 }
  0x2c   : > { %374 = vmatpush1.bf16.msra.mxu0 %v1058_v3  ;;  %501 = vmatpush1.bf16.msra.mxu1 %v1059_v4  ;;  %v885_v12 = vld [vmem:[%s1324_s22 + $0x8] sm:$0xff]  ;;  %v886_v13 = vld [vmem:[%s1324_s22 + $0x10] sm:$0xff]  ;;  %v239_v14 = vld [vmem:[%s1324_s22] sm:$0xff]  ;;  %s786_s14 = sshll.u32 %s222_s13, 4  ;;  %s1125_s6 = scalar_lea.vmem %s1124_s5, 512  ;;  %s1390_s14 = int_to_ptr.vmem [resolvable:$true] %s786_s14 }
  0x2d   : > { %375 = vmatprep.subr.bf16.mxu0 %v1204_v0  ;;  %502 = vmatprep.subr.bf16.mxu1 %v1204_v0  ;;  %v890_v16 = vcombine.high %v885_v12, %v886_v13  ;;  %v905_v17 = vcombine.high %v239_v14, %v885_v12  ;;  %v1073_v25 = vld [vmem:[#allocation2 + $0x40] sm:$0xff]   ;;  %v889_v27 = vcombine.low %v885_v12, %v886_v13  ;;  %v887_v28 = vld [vmem:[%s1324_s22 + $0x18] sm:$0xff]  ;;  %v724_v30 = vld [vmem:[%s1447_s3 + $0x8] sm:$0xff]  ;;  %s1119_s29 = scalar_lea.vmem %s1390_s14, 256  ;;  %p1126_p0 = scmp.lt.s32.totalorder %s1390_s14, %s1124_s5 }
  0x2e   : > { %729 = vperm.xlu0 %1054, %v723_v23   ;;  %v1351_v29 = vld [vmem:[%s1324_s22 + $0x20] sm:$0xff]  ;;  %v904_v31 = vcombine.low %v239_v14, %v885_v12  ;;  %v1078_v32 = vld [vmem:[#allocation2 + $0xc8] sm:$0xff]   ;;  %v907_v34 = vcombine.high %v886_v13, %v887_v28  ;;  %v1080_v37 = vld [vmem:[#allocation2 + $0xb8] sm:$0xff]   ;;  %v906_v38 = vcombine.low %v886_v13, %v887_v28  ;;  %p1120_p11 = scmp.ne.s32.totalorder %s1390_s14, %s1119_s29  ;;  %p1127_p1 = scmp.lt.s32.totalorder %s1125_s6, %s1119_s29 }
  0x2f   : > { %902 = vmatprep.mubr.msk.bf16.mxu0 %vm364_vm0, %v890_v16  ;;  %917 = vmatprep.mubr.msk.bf16.mxu1 %vm364_vm0, %v905_v17  ;;  %v892_v33 = vcombine.high %v887_v28, %v1351_v29  ;;  %v1079_v35 = vld [vmem:[#allocation2 + $0xc0] sm:$0xff]   ;;  %v891_v36 = vcombine.low %v887_v28, %v1351_v29  ;;  %v922_v39 = vld [vmem:[%s1324_s22 + $0x28] sm:$0xff]  ;;  %v1081_v41 = vld [vmem:[#allocation2 + $0xb0] sm:$0xff]  }
  0x30   : > { %376 = vmatpush1.bf16.msra.mxu0 %v1060_v5  ;;  %503 = vmatpush1.bf16.msra.mxu1 %v1061_v6  ;;  %v926_v40 = vcombine.high %v1351_v29, %v922_v39  ;;  %v1082_v42 = vld [vmem:[#allocation2 + $0xa8] sm:$0xff]   ;;  %v1085_v43 = vld [vmem:[#allocation2 + $0xa0] sm:$0xff]   ;;  %v1088_v44 = vld [vmem:[#allocation2 + $0x98] sm:$0xff]   ;;  %v925_v47 = vcombine.low %v1351_v29, %v922_v39  ;;  %p1121_p12 = pnand %p1120_p11, %p1273_p4  ;;  %p1128_p2 = por %p1127_p1, %p1126_p0 }
  0x31   : > { %377 = vmatprep.subr.bf16.mxu0 %v1204_v0  ;;  %504 = vmatprep.subr.bf16.mxu1 %v1204_v0  ;;  %v1089_v45 = vld [vmem:[#allocation2 + $0x90] sm:$0xff]   ;;  %v938_v3 = vld [vmem:[%s1446_s2] ss:$0 sm:$0xff] }
  0x32   : > { %744 = vperm.xlu1 %1055, %v726_v26   ;;  %734 = vperm.xlu0 %1054, %v724_v30   ;;  %v1090_v46 = vld [vmem:[#allocation2 + $0xd0] sm:$0xff]   ;;  %p1122_p13 = pneg %p1121_p12 }
  0x34   : > { %378 = vmatpush1.bf16.msra.mxu0 %v1062_v7  ;;  %505 = vmatpush1.bf16.msra.mxu1 %v1063_v8  ;;  %p1129_p3 = pnand %p1128_p2, %p1122_p13 }
  0x35   : > { %379 = vmatprep.subr.bf16.mxu0 %v1204_v0  ;;  %506 = vmatprep.subr.bf16.mxu1 %v1204_v0 }
  0x38   : > { %380 = vmatpush1.bf16.msra.mxu0 %v1064_v9  ;;  %507 = vmatpush1.bf16.msra.mxu1 %v1065_v10 }
  0x39   : > { %381 = vmatprep.subr.bf16.mxu0 %v1204_v0  ;;  %508 = vmatprep.subr.bf16.mxu1 %v1204_v0 }
  0x3c   : > { %382 = vmatpush1.bf16.msra.mxu0 %v1066_v11  ;;  %509 = vmatpush1.bf16.msra.mxu1 %v1067_v15 }
  0x3d   : > { %383 = vmatprep.subr.bf16.mxu0 %v1204_v0  ;;  %510 = vmatprep.subr.bf16.mxu1 %v1204_v0 }
  0x40   : > { %384 = vmatpush1.bf16.msra.mxu0 %v1068_v18  ;;  %511 = vmatpush1.bf16.msra.mxu1 %v1069_v19 }
  0x41   : > { %385 = vmatprep.subr.bf16.mxu0 %v1204_v0  ;;  %512 = vmatprep.subr.bf16.mxu1 %v1204_v0 }
  0x44   : > { %386 = vmatpush1.bf16.msra.mxu0 %v1070_v20  ;;  %513 = vmatpush1.bf16.msra.mxu1 %v1071_v21 }
  0x45   : > { %401 = vmatprep.subr.bf16.mxu0 %v1204_v0  ;;  %528 = vmatprep.subr.bf16.mxu1 %v1204_v0 }
  0x48   : > { %402 = vmatpush2.bf16.msra.mxu0 %v1072_v24  ;;  %529 = vmatpush2.bf16.msra.mxu1 %v1073_v25 }
  0x49   : > { %655 = vmatprep.subr.bf16.mxu0 %v1204_v0  ;;  %965 = vmatprep.subr.bf16.mxu1 %v1204_v0 }
  0x4b   : > { %404 = vmatmul.mubr.bf16.vlgmr.msra.gmra.mxu0 %v889_v27  ;;  %531 = vmatmul.mubr.bf16.vlgmr.msra.gmra.mxu1 %v904_v31 }
  0x4c   : > { %656 = vmatpush1.bf16.msra.mxu0 %v1078_v32  ;;  %974 = vmatpush1.bf16.msra.mxu1 %v1078_v32 }
  0x4d   : > { %657 = vmatprep.subr.bf16.mxu0 %v1204_v0  ;;  %966 = vmatprep.subr.bf16.mxu1 %v1204_v0 }
  0x4e   : > { %903 = vmatprep.mubr.msk.bf16.mxu0 %vm364_vm0, %v892_v33  ;;  %918 = vmatprep.mubr.msk.bf16.mxu1 %vm364_vm0, %v907_v34 }
  0x50   : > { %658 = vmatpush1.bf16.msra.mxu0 %v1079_v35  ;;  %975 = vmatpush1.bf16.msra.mxu1 %v1079_v35 }
  0x51   : > { %659 = vmatprep.subr.bf16.mxu0 %v1204_v0  ;;  %967 = vmatprep.subr.bf16.mxu1 %v1204_v0 }
  0x53   : > { %412 = vmatmul.mubr.bf16.gmra.mxu0 %v891_v36  ;;  %539 = vmatmul.mubr.bf16.gmra.mxu1 %v906_v38 }
  0x54   : > { %660 = vmatpush1.bf16.msra.mxu0 %v1080_v37  ;;  %976 = vmatpush1.bf16.msra.mxu1 %v1080_v37 }
  0x55   : > { %661 = vmatprep.subr.bf16.mxu0 %v1204_v0  ;;  %968 = vmatprep.subr.bf16.mxu1 %v1204_v0 }
  0x56   : > { %936 = vmatprep.mubr.msk.bf16.mxu0 %vm364_vm0, %v907_v34  ;;  %937 = vmatprep.mubr.msk.bf16.mxu1 %vm364_vm0, %v926_v40 }
  0x58   : > { %662 = vmatpush1.bf16.msra.mxu0 %v1081_v41  ;;  %977 = vmatpush1.bf16.msra.mxu1 %v1081_v41 }
  0x59   : > { %663 = vmatprep.subr.bf16.mxu0 %v1204_v0  ;;  %969 = vmatprep.subr.bf16.mxu1 %v1204_v0 }
  0x5c   : > { %664 = vmatpush1.bf16.msra.mxu0 %v1082_v42  ;;  %978 = vmatpush1.bf16.msra.mxu1 %v1082_v42 }
  0x5d   : > { %665 = vmatprep.subr.bf16.mxu0 %v1204_v0  ;;  %970 = vmatprep.subr.bf16.mxu1 %v1204_v0 }
  0x60   : > { %666 = vmatpush1.bf16.msra.mxu0 %v1085_v43  ;;  %979 = vmatpush1.bf16.msra.mxu1 %v1085_v43 }
  0x61   : > { %667 = vmatprep.subr.bf16.mxu0 %v1204_v0  ;;  %971 = vmatprep.subr.bf16.mxu1 %v1204_v0 }
  0x64   : > { %668 = vmatpush1.bf16.msra.mxu0 %v1088_v44  ;;  %980 = vmatpush1.bf16.msra.mxu1 %v1088_v44 }
  0x65   : > { %669 = vmatprep.subr.bf16.mxu0 %v1204_v0  ;;  %972 = vmatprep.subr.bf16.mxu1 %v1204_v0 }
  0x68   : > { %670 = vmatpush1.bf16.msra.mxu0 %v1089_v45  ;;  %981 = vmatpush1.bf16.msra.mxu1 %v1089_v45 }
  0x69   : > { %685 = vmatprep.subr.bf16.mxu0 %v1204_v0  ;;  %973 = vmatprep.subr.bf16.mxu1 %v1204_v0 }
  0x6c   : > { %686 = vmatpush2.bf16.msra.mxu0 %v1090_v46  ;;  %982 = vmatpush2.bf16.msra.mxu1 %v1090_v46 }
  0x6f   : > { %688 = vmatmul.mubr.bf16.vlgmr.msra.gmra.mxu0 %v906_v38  ;;  %696 = vmatmul.mubr.bf16.vlgmr.msra.gmra.mxu1 %v925_v47 }
  0xa6   : > { %v740_v15 = vpop.permute.xlu1 %739 }
  0xa9   : > { %v730_v13 = vpop.permute.xlu0 %729 }
  0xad   : > { %v735_v27 = vpop.permute.xlu0 %734  ;;  %v745_v29 = vpop.permute.xlu1 %744 }
 0x10b   : > { %v405_v48 = vpop.f32.mrf.mxu0  ;;  %v532_v49 = vpop.f32.mrf.mxu1 }
 0x10c   : > { %v533_v0 = vadd.f32 %v532_v49, %v405_v48 }
 0x10d   : > { %v407_v50 = vpop.f32.mrf.mxu0  ;;  %v534_v51 = vpop.f32.mrf.mxu1 }
 0x10f   : > { %v408_v52 = vpop.f32.mrf.mxu0  ;;  %v535_v53 = vpop.f32.mrf.mxu1 }
 0x110   : > { %v536_v8 = vadd.f32 %v535_v53, %v408_v52 }
 0x111   : > { %v410_v54 = vpop.f32.mrf.mxu0  ;;  %v537_v55 = vpop.f32.mrf.mxu1 }
 0x113   : > { %v413_v56 = vpop.f32.mrf.mxu0  ;;  %v540_v57 = vpop.f32.mrf.mxu1 }
 0x114   : > { %v541_v1 = vadd.f32 %v540_v57, %v413_v56 }
 0x115   : > { %v415_v58 = vpop.f32.mrf.mxu0  ;;  %v542_v59 = vpop.f32.mrf.mxu1 }
 0x117   : > { %v416_v60 = vpop.f32.mrf.mxu0  ;;  %v543_v61 = vpop.f32.mrf.mxu1 }
 0x118   : > { %v544_v11 = vadd.f32 %v543_v61, %v416_v60 }
 0x119   : > { %v418_v62 = vpop.f32.mrf.mxu0  ;;  %v545_v63 = vpop.f32.mrf.mxu1 }
 0x12f   : > { %v689_v2 = vpop.f32.mrf.mxu0  ;;  %v697_v5 = vpop.f32.mrf.mxu1 }
 0x130   : > { %v704_v4 = vadd.f32 %v689_v2, %v533_v0  ;;  %v706_v6 = vadd.f32 %v697_v5, %v541_v1 }
 0x131   : > { %v691_v7 = vpop.f32.mrf.mxu0  ;;  %v699_v10 = vpop.f32.mrf.mxu1 }
 0x132   : > { %v715_v9 = vadd.f32 %v938_v3, %v704_v4  ;;  %v717_v12 = vadd.f32 %v938_v3, %v706_v6 }
 0x133   : > { %v692_v14 = vpop.f32.mrf.mxu0  ;;  %v700_v17 = vpop.f32.mrf.mxu1 }
 0x134   : > { %v705_v16 = vadd.f32 %v692_v14, %v536_v8  ;;  %v707_v18 = vadd.f32 %v700_v17, %v544_v11  ;;  %v719_v20 = vmax.f32 %v715_v9, 0.0  ;;  %v721_v23 = vmax.f32 %v717_v12, 0.0 }
 0x135   : > { %v694_v19 = vpop.f32.mrf.mxu0  ;;  %v702_v22 = vpop.f32.mrf.mxu1 }
 0x136   : > { %v716_v21 = vadd.f32 %v938_v3, %v705_v16  ;;  %v718_v24 = vadd.f32 %v938_v3, %v707_v18  ;;  %v747_v28 = vmul.f32 %v730_v13, %v719_v20  ;;  %v749_v31 = vmul.f32 %v740_v15, %v721_v23 }
 0x138   : > { %v720_v25 = vmax.f32 %v716_v21, 0.0  ;;  %v722_v26 = vmax.f32 %v718_v24, 0.0 }
 0x13a   : > { %v748_v30 = vmul.f32 %v735_v27, %v720_v25  ;;  %v750_v32 = vmul.f32 %v745_v29, %v722_v26 }
 0x13c   : > { %v957_v33 = vpack.c.bf16 %v748_v30, %v747_v28  ;;  %v962_v34 = vpack.c.bf16 %v750_v32, %v749_v31 }
 0x13e   : > { %958 = vst [vmem:[%s222_s13] sm:$0xff] %v957_v33   ;;  %964 = vst [vmem:[%s222_s13 + $0x8] sm:$0xff] %v962_v34  }
 0x13f   : > { %1132 = shalt.err (!%p1129_p3)
}
 0x140   : > { %s1133_s7 = scalar_lea.hbm %s1395_s26, 256  ;;  %s1137_s10 = scalar_lea.hbm %s1448_s4, 512 }
 0x141   : > { %p1134_p5 = scmp.ne.s32.totalorder %s1395_s26, %s1133_s7  ;;  %p1138_p9 = scmp.lt.s32.totalorder %s1395_s26, %s1448_s4 }
 0x142   : > { %p1139_p10 = scmp.lt.s32.totalorder %s1137_s10, %s1133_s7 }
 0x143   : > { %p1135_p6 = pnand %p1134_p5, %p1273_p4 }
 0x144   : > { %p1140_p11 = por %p1139_p10, %p1138_p9 }
 0x145   : > { %p1136_p7 = pneg %p1135_p6 }
 0x147   : > { %p1141_p12 = pnand %p1140_p11, %p1136_p7 }
 0x149   : > { %1144 = shalt.err (!%p1141_p12)
}
 0x14a   : > { %s1206_s13 = smov 64   ;;  %s1207_s21 = smov 4  }
 0x14b   : > { %987 = dma.vmem_to_hbm [thread:$0]  (%p1273_p4), %s1390_s14, 256, %s1395_s26, %s1399_s18, %s1206_s13, %s1206_s13, %s1207_s21  }
 0x14c PF: > { %p999_p13 = scmp.ge.s32.totalorder %s1199_s20, 2  ;;  %s801_s22 = sand.u32 1, %s1179_s15  }
 0x14d   : > { %s802_s24 = scalar_lea.sflag [#allocation4], %s801_s22 }
 0x14e   : > { %p994_p0 = pnand %p999_p13, %p1280_p8 }
 0x150   : > { %p995_p1 = pneg %p994_p0 }
 0x152   : > { %1174 = dma.done.wait (%p995_p1), %s802_s24, 256  }
 0x153   : > { %1176 = vsyncadd (%p995_p1), %s802_s24, 4294967040  ;;  %s18_s20 = sadd.s32 1, %s1199_s20   ;;  %s1453_s15 = smov %s1183_s16 }
 0x154   : > { %p15_p2 = scmp.ge.s32.totalorder %s18_s20, 4   ;;  %s1454_s16 = smov %s1187_s17 }
 0x155   : > { %s1455_s17 = smov %s1286_s28  ;;  %s1456_s18 = smov %s1195_s19 }
 0x156   : > { %s1457_s19 = smov %s1459_s23  ;;  %17 = sbr.rel (!%p15_p2) target bundleno = 5 (0x5), region = 81 }
 0x15b   :  { %807 = vsyncpa [#allocation3], 1 }
 0x15c   :  { %809 = vsyncpa [#allocation3 + $0x1], 1 }
 0x15d   :  { %810 = vsyncpa [#allocation4], 1 }
 0x15e   :  { %812 = vsyncpa [#allocation4 + $0x1], 1 }

</bundles_post_ra>
